<compile_context>
chip_gen: v6e
topology: v6e:2x2x1
jax: 0.10.0
libtpu: 0.0.40
codegen_flags: <defaults>
</compile_context>

<pallas_src>
import functools

import jax
import jax.numpy as jnp
from jax.experimental import pallas as pl
from jax.experimental.pallas import tpu as pltpu

EMB_DIM = 32
NUM_LAYER = 2
NUM_NODES = 8
NUM_EDGES = 16
ATOM_FEATS = 3
ATOM_VOCAB = 10
BOND_FEATS = 2
BOND_VOCAB = 5
BN_EPS = 1e-5


# ---------------------------------------------------------------------------
# Pallas kernel: ALL GIN layers fused (GINConv + folded BNs + act + residual)
# ---------------------------------------------------------------------------
def _gin_encoder_kernel(epsp1_ref, h_ref, g_ref, s_ref, ee_ref,
                        w1_ref, w2_ref, bias_ref, out_ref, *, num_layer):
    d = h_ref.shape[1]
    h = h_ref[...]          # [N, D]  node features, resident across all layers
    g = g_ref[...]          # [E, N]  one-hot source gather
    s = s_ref[...]          # [N, E]  one-hot destination scatter

    for layer in range(num_layer):  # static unroll (NUM_LAYER known at trace time)
        # --- message passing (aggr='add'): msg = relu(h[src] + edge_emb); scatter-add ---
        # TODO(synk): dense one-hot matmuls are exact but O(E*N); switch to an
        # index-driven (scalar-prefetch src/dst) gather/scatter before scaling N,E.
        xj = jnp.dot(g, h, preferred_element_type=jnp.float32)        # [E, D]
        msg = jnp.maximum(xj + ee_ref[layer], 0.0)                     # [E, D]
        agg = jnp.dot(s, msg, preferred_element_type=jnp.float32)      # [N, D]
        z = epsp1_ref[layer] * h + agg                                  # (1+eps)*h + agg

        # --- GINConv MLP with eval-mode BatchNorms folded into (w1,b1)/(w2,b2):
        #     Linear(D,2D) -> [BN1 folded] -> ReLU -> Linear(2D,D) -> [outer BN folded]
        b = bias_ref[layer]                                             # [2, 2D]
        b1 = b[0:1, :]                                                  # [1, 2D]
        b2 = b[1:2, :d]                                                 # [1, D]
        t = jnp.maximum(
            jnp.dot(z, w1_ref[layer], preferred_element_type=jnp.float32) + b1, 0.0)
        u = jnp.dot(t, w2_ref[layer], preferred_element_type=jnp.float32) + b2

        # intermediate layers: ReLU before (eval-mode identity) dropout; last layer: none
        if layer != num_layer - 1:
            u = jnp.maximum(u, 0.0)

        # dropout (eval) == identity; residual connection
        h = u + h

    out_ref[...] = h


def gin_encoder_pallas(h0, gmat, smat, ee_all, w1_all, w2_all, bias_all, epsp1):
    num_layer = ee_all.shape[0]
    vspec = pl.BlockSpec(memory_space=pltpu.MemorySpace.VMEM)
    sspec = pl.BlockSpec(memory_space=pltpu.MemorySpace.SMEM)
    kernel = functools.partial(_gin_encoder_kernel, num_layer=num_layer)
    return pl.pallas_call(
        kernel,
        out_shape=jax.ShapeDtypeStruct(h0.shape, jnp.float32),
        in_specs=[sspec, vspec, vspec, vspec, vspec, vspec, vspec, vspec],
        out_specs=vspec,
        input_output_aliases={1: 0},   # h0 buffer reused for the final output
    )(epsp1, h0, gmat, smat, ee_all, w1_all, w2_all, bias_all)


# ---------------------------------------------------------------------------
# Parameter initialization (deterministic, synthetic; raw un-folded params)
# ---------------------------------------------------------------------------
def init_params(key, num_layer=NUM_LAYER, emb_dim=EMB_DIM):
    keys = iter(jax.random.split(key, 8 + num_layer * 16))
    params = {
        "atom_emb": [0.1 * jax.random.normal(next(keys), (ATOM_VOCAB, emb_dim), jnp.float32)
                     for _ in range(ATOM_FEATS)],
        "layers": [],
    }
    for _ in range(num_layer):
        lp = {
            "bond_emb": [0.1 * jax.random.normal(next(keys), (BOND_VOCAB, emb_dim), jnp.float32)
                         for _ in range(BOND_FEATS)],
            "eps": jnp.zeros((1,), jnp.float32),
            "w1": 0.1 * jax.random.normal(next(keys), (emb_dim, 2 * emb_dim), jnp.float32),
            "b1": 0.05 * jax.random.normal(next(keys), (1, 2 * emb_dim), jnp.float32),
            "bn1_g": 1.0 + 0.1 * jax.random.normal(next(keys), (1, 2 * emb_dim), jnp.float32),
            "bn1_b": 0.05 * jax.random.normal(next(keys), (1, 2 * emb_dim), jnp.float32),
            "bn1_m": 0.05 * jax.random.normal(next(keys), (1, 2 * emb_dim), jnp.float32),
            "bn1_v": 1.0 + 0.1 * jax.random.uniform(next(keys), (1, 2 * emb_dim), jnp.float32),
            "w2": 0.1 * jax.random.normal(next(keys), (2 * emb_dim, emb_dim), jnp.float32),
            "b2": 0.05 * jax.random.normal(next(keys), (1, emb_dim), jnp.float32),
            "bn2_g": 1.0 + 0.1 * jax.random.normal(next(keys), (1, emb_dim), jnp.float32),
            "bn2_b": 0.05 * jax.random.normal(next(keys), (1, emb_dim), jnp.float32),
            "bn2_m": 0.05 * jax.random.normal(next(keys), (1, emb_dim), jnp.float32),
            "bn2_v": 1.0 + 0.1 * jax.random.uniform(next(keys), (1, emb_dim), jnp.float32),
        }
        params["layers"].append(lp)
    return params


# ---------------------------------------------------------------------------
# Forward pass: glue (embedding gathers, BN folding, param stacking) in JAX,
# all per-layer hot-path compute in ONE fused Pallas kernel.
# ---------------------------------------------------------------------------
def gin_mol_head_encoder(params, x, edge_index, edge_attr, batch):
    del batch  # unused by the reference forward (JK='last', no pooling here)
    n = x.shape[0]
    e = edge_index.shape[1]
    d = EMB_DIM

    # AtomEncoder: sum of per-feature embeddings
    h0 = jnp.zeros((n, d), jnp.float32)
    for f in range(ATOM_FEATS):
        h0 = h0 + jnp.take(params["atom_emb"][f], x[:, f], axis=0)

    # one-hot gather (source) / scatter (destination) matrices, shared by layers
    src, dst = edge_index[0], edge_index[1]
    gmat = (src[:, None] == jnp.arange(n)[None, :]).astype(jnp.float32)   # [E, N]
    smat = (jnp.arange(n)[:, None] == dst[None, :]).astype(jnp.float32)   # [N, E]

    # Per-layer: bond embeddings + eval-mode BN folding into the Linear weights/biases.
    ee_list, w1_list, w2_list, bias_list, epsp1_list = [], [], [], [], []
    for lp in params["layers"]:
        ee = jnp.zeros((e, d), jnp.float32)
        for f in range(BOND_FEATS):
            ee = ee + jnp.take(lp["bond_emb"][f], edge_attr[:, f], axis=0)
        ee_list.append(ee)

        scale1 = lp["bn1_g"] * jax.lax.rsqrt(lp["bn1_v"] + BN_EPS)       # [1, 2D]
        w1f = lp["w1"] * scale1                                          # [D, 2D]
        b1f = (lp["b1"] - lp["bn1_m"]) * scale1 + lp["bn1_b"]            # [1, 2D]
        scale2 = lp["bn2_g"] * jax.lax.rsqrt(lp["bn2_v"] + BN_EPS)       # [1, D]
        w2f = lp["w2"] * scale2                                          # [2D, D]
        b2f = (lp["b2"] - lp["bn2_m"]) * scale2 + lp["bn2_b"]            # [1, D]
        w1_list.append(w1f)
        w2_list.append(w2f)
        # pack both bias rows into one [2, 2D] slab (b2 padded to 2D with zeros)
        bias_list.append(jnp.concatenate(
            [b1f, jnp.concatenate([b2f, jnp.zeros((1, d), jnp.float32)], axis=1)], axis=0))
        epsp1_list.append(1.0 + lp["eps"][0])

    ee_all = jnp.stack(ee_list)        # [L, E, D]
    w1_all = jnp.stack(w1_list)        # [L, D, 2D]
    w2_all = jnp.stack(w2_list)        # [L, 2D, D]
    bias_all = jnp.stack(bias_list)    # [L, 2, 2D]
    epsp1 = jnp.stack(epsp1_list)      # [L]  (1 + eps) per layer, lives in SMEM

    return gin_encoder_pallas(h0, gmat, smat, ee_all, w1_all, w2_all, bias_all, epsp1)


# ---------------------------------------------------------------------------
# Pure-JAX reference (same eval-mode math, un-folded BN) for correctness check
# ---------------------------------------------------------------------------
def reference_forward(params, x, edge_index, edge_attr, batch):
    del batch
    n = x.shape[0]
    h = jnp.zeros((n, EMB_DIM), jnp.float32)
    for f in range(ATOM_FEATS):
        h = h + jnp.take(params["atom_emb"][f], x[:, f], axis=0)
    src, dst = edge_index[0], edge_index[1]
    for layer in range(NUM_LAYER):
        lp = params["layers"][layer]
        edge_emb = jnp.zeros((edge_index.shape[1], EMB_DIM), jnp.float32)
        for f in range(BOND_FEATS):
            edge_emb = edge_emb + jnp.take(lp["bond_emb"][f], edge_attr[:, f], axis=0)
        msg = jnp.maximum(h[src] + edge_emb, 0.0)
        agg = jax.ops.segment_sum(msg, dst, num_segments=n)
        z = (1.0 + lp["eps"][0]) * h + agg
        t = z @ lp["w1"] + lp["b1"]
        t = lp["bn1_g"] * (t - lp["bn1_m"]) / jnp.sqrt(lp["bn1_v"] + BN_EPS) + lp["bn1_b"]
        t = jnp.maximum(t, 0.0)
        u = t @ lp["w2"] + lp["b2"]
        u = lp["bn2_g"] * (u - lp["bn2_m"]) / jnp.sqrt(lp["bn2_v"] + BN_EPS) + lp["bn2_b"]
        if layer != NUM_LAYER - 1:
            u = jnp.maximum(u, 0.0)
        h = u + h
    return h


if __name__ == "__main__":
    key = jax.random.PRNGKey(0)
    k_params, k_x, k_ea, k_ei = jax.random.split(key, 4)

    params = init_params(k_params)

    # synthetic molecular graph: 8 nodes, 16 directed edges
    x = jax.random.randint(k_x, (NUM_NODES, ATOM_FEATS), 0, ATOM_VOCAB, jnp.int32)
    edge_attr = jax.random.randint(k_ea, (NUM_EDGES, BOND_FEATS), 0, BOND_VOCAB, jnp.int32)
    edge_index = jax.random.randint(k_ei, (2, NUM_EDGES), 0, NUM_NODES, jnp.int32)
    batch = jnp.zeros((NUM_NODES,), jnp.int32)

    out = gin_mol_head_encoder(params, x, edge_index, edge_attr, batch)
    out = jax.block_until_ready(out)

    ref = jax.block_until_ready(reference_forward(params, x, edge_index, edge_attr, batch))
    assert out.shape == (NUM_NODES, EMB_DIM)
    assert jnp.allclose(out, ref, atol=1e-4, rtol=1e-4), "mismatch vs pure-JAX reference"

    print("KERNEL_OK")
</pallas_src>

<mosaic_0001>
module attributes {stable_mosaic.version = 11 : i64} {
  func.func @_gin_encoder_kernel(%arg0: memref<2xf32, #tpu.memory_space<smem>>, %arg1: memref<8x32xf32, #tpu.memory_space<vmem>>, %arg2: memref<16x8xf32, #tpu.memory_space<vmem>>, %arg3: memref<8x16xf32, #tpu.memory_space<vmem>>, %arg4: memref<2x16x32xf32, #tpu.memory_space<vmem>>, %arg5: memref<2x32x64xf32, #tpu.memory_space<vmem>>, %arg6: memref<2x64x32xf32, #tpu.memory_space<vmem>>, %arg7: memref<2x2x64xf32, #tpu.memory_space<vmem>>, %arg8: memref<8x32xf32, #tpu.memory_space<vmem>>) attributes {dimension_semantics = [], scalar_prefetch = 0 : i64, scratch_operands = 0 : i64, tpu.core_type = #tpu.core_type<tc>} {
    %c0 = arith.constant 0 : index
    %c0_0 = arith.constant 0 : index
    %0 = vector.load %arg1[%c0, %c0_0] : memref<8x32xf32, #tpu.memory_space<vmem>>, vector<8x32xf32>
    %c0_1 = arith.constant 0 : index
    %c0_2 = arith.constant 0 : index
    %1 = vector.load %arg2[%c0_1, %c0_2] : memref<16x8xf32, #tpu.memory_space<vmem>>, vector<16x8xf32>
    %c0_3 = arith.constant 0 : index
    %c0_4 = arith.constant 0 : index
    %2 = vector.load %arg3[%c0_3, %c0_4] : memref<8x16xf32, #tpu.memory_space<vmem>>, vector<8x16xf32>
    %cst = arith.constant dense<0.000000e+00> : vector<16x32xf32>
    %3 = tpu.matmul %1, %0, %cst {dimension_numbers = #tpu.dot_dimension_numbers<[1], [0], [0], [1], [0, 0, 1, 1], [], []>} : vector<16x8xf32>, vector<8x32xf32>, vector<16x32xf32> -> vector<16x32xf32>
    %c0_5 = arith.constant 0 : index
    %c0_6 = arith.constant 0 : index
    %c0_7 = arith.constant 0 : index
    %4 = vector.load %arg4[%c0_5, %c0_6, %c0_7] : memref<2x16x32xf32, #tpu.memory_space<vmem>>, vector<1x16x32xf32>
    %5 = vector.shape_cast %4 : vector<1x16x32xf32> to vector<16x32xf32>
    %6 = arith.addf %3, %5 : vector<16x32xf32>
    %cst_8 = arith.constant 0.000000e+00 : f32
    %7 = vector.broadcast %cst_8 : f32 to vector<16x32xf32>
    %8 = arith.maximumf %6, %7 : vector<16x32xf32>
    %cst_9 = arith.constant dense<0.000000e+00> : vector<8x32xf32>
    %9 = tpu.matmul %2, %8, %cst_9 {dimension_numbers = #tpu.dot_dimension_numbers<[1], [0], [0], [1], [0, 0, 1, 1], [], []>} : vector<8x16xf32>, vector<16x32xf32>, vector<8x32xf32> -> vector<8x32xf32>
    %c0_10 = arith.constant 0 : index
    %10 = memref.load %arg0[%c0_10] : memref<2xf32, #tpu.memory_space<smem>>
    %11 = vector.broadcast %10 : f32 to vector<8x32xf32>
    %12 = arith.mulf %11, %0 : vector<8x32xf32>
    %13 = arith.addf %12, %9 : vector<8x32xf32>
    %c0_11 = arith.constant 0 : index
    %c0_12 = arith.constant 0 : index
    %c0_13 = arith.constant 0 : index
    %14 = vector.load %arg7[%c0_11, %c0_12, %c0_13] : memref<2x2x64xf32, #tpu.memory_space<vmem>>, vector<1x2x64xf32>
    %15 = vector.shape_cast %14 : vector<1x2x64xf32> to vector<2x64xf32>
    %16 = vector.extract_strided_slice %15 {offsets = [0, 0], sizes = [1, 64], strides = [1, 1]} : vector<2x64xf32> to vector<1x64xf32>
    %17 = vector.extract_strided_slice %15 {offsets = [1, 0], sizes = [1, 32], strides = [1, 1]} : vector<2x64xf32> to vector<1x32xf32>
    %c0_14 = arith.constant 0 : index
    %c0_15 = arith.constant 0 : index
    %c0_16 = arith.constant 0 : index
    %18 = vector.load %arg5[%c0_14, %c0_15, %c0_16] : memref<2x32x64xf32, #tpu.memory_space<vmem>>, vector<1x32x64xf32>
    %19 = vector.shape_cast %18 : vector<1x32x64xf32> to vector<32x64xf32>
    %cst_17 = arith.constant dense<0.000000e+00> : vector<8x64xf32>
    %20 = tpu.matmul %13, %19, %cst_17 {dimension_numbers = #tpu.dot_dimension_numbers<[1], [0], [0], [1], [0, 0, 1, 1], [], []>} : vector<8x32xf32>, vector<32x64xf32>, vector<8x64xf32> -> vector<8x64xf32>
    %21 = vector.broadcast %16 : vector<1x64xf32> to vector<8x64xf32>
    %22 = arith.addf %20, %21 : vector<8x64xf32>
    %cst_18 = arith.constant 0.000000e+00 : f32
    %23 = vector.broadcast %cst_18 : f32 to vector<8x64xf32>
    %24 = arith.maximumf %22, %23 : vector<8x64xf32>
    %c0_19 = arith.constant 0 : index
    %c0_20 = arith.constant 0 : index
    %c0_21 = arith.constant 0 : index
    %25 = vector.load %arg6[%c0_19, %c0_20, %c0_21] : memref<2x64x32xf32, #tpu.memory_space<vmem>>, vector<1x64x32xf32>
    %26 = vector.shape_cast %25 : vector<1x64x32xf32> to vector<64x32xf32>
    %cst_22 = arith.constant dense<0.000000e+00> : vector<8x32xf32>
    %27 = tpu.matmul %24, %26, %cst_22 {dimension_numbers = #tpu.dot_dimension_numbers<[1], [0], [0], [1], [0, 0, 1, 1], [], []>} : vector<8x64xf32>, vector<64x32xf32>, vector<8x32xf32> -> vector<8x32xf32>
    %28 = vector.broadcast %17 : vector<1x32xf32> to vector<8x32xf32>
    %29 = arith.addf %27, %28 : vector<8x32xf32>
    %cst_23 = arith.constant 0.000000e+00 : f32
    %30 = vector.broadcast %cst_23 : f32 to vector<8x32xf32>
    %31 = arith.maximumf %29, %30 : vector<8x32xf32>
    %32 = arith.addf %31, %0 : vector<8x32xf32>
    %cst_24 = arith.constant dense<0.000000e+00> : vector<16x32xf32>
    %33 = tpu.matmul %1, %32, %cst_24 {dimension_numbers = #tpu.dot_dimension_numbers<[1], [0], [0], [1], [0, 0, 1, 1], [], []>} : vector<16x8xf32>, vector<8x32xf32>, vector<16x32xf32> -> vector<16x32xf32>
    %c1 = arith.constant 1 : index
    %c0_25 = arith.constant 0 : index
    %c0_26 = arith.constant 0 : index
    %34 = vector.load %arg4[%c1, %c0_25, %c0_26] : memref<2x16x32xf32, #tpu.memory_space<vmem>>, vector<1x16x32xf32>
    %35 = vector.shape_cast %34 : vector<1x16x32xf32> to vector<16x32xf32>
    %36 = arith.addf %33, %35 : vector<16x32xf32>
    %cst_27 = arith.constant 0.000000e+00 : f32
    %37 = vector.broadcast %cst_27 : f32 to vector<16x32xf32>
    %38 = arith.maximumf %36, %37 : vector<16x32xf32>
    %cst_28 = arith.constant dense<0.000000e+00> : vector<8x32xf32>
    %39 = tpu.matmul %2, %38, %cst_28 {dimension_numbers = #tpu.dot_dimension_numbers<[1], [0], [0], [1], [0, 0, 1, 1], [], []>} : vector<8x16xf32>, vector<16x32xf32>, vector<8x32xf32> -> vector<8x32xf32>
    %c1_29 = arith.constant 1 : index
    %40 = memref.load %arg0[%c1_29] : memref<2xf32, #tpu.memory_space<smem>>
    %41 = vector.broadcast %40 : f32 to vector<8x32xf32>
    %42 = arith.mulf %41, %32 : vector<8x32xf32>
    %43 = arith.addf %42, %39 : vector<8x32xf32>
    %c1_30 = arith.constant 1 : index
    %c0_31 = arith.constant 0 : index
    %c0_32 = arith.constant 0 : index
    %44 = vector.load %arg7[%c1_30, %c0_31, %c0_32] : memref<2x2x64xf32, #tpu.memory_space<vmem>>, vector<1x2x64xf32>
    %45 = vector.shape_cast %44 : vector<1x2x64xf32> to vector<2x64xf32>
    %46 = vector.extract_strided_slice %45 {offsets = [0, 0], sizes = [1, 64], strides = [1, 1]} : vector<2x64xf32> to vector<1x64xf32>
    %47 = vector.extract_strided_slice %45 {offsets = [1, 0], sizes = [1, 32], strides = [1, 1]} : vector<2x64xf32> to vector<1x32xf32>
    %c1_33 = arith.constant 1 : index
    %c0_34 = arith.constant 0 : index
    %c0_35 = arith.constant 0 : index
    %48 = vector.load %arg5[%c1_33, %c0_34, %c0_35] : memref<2x32x64xf32, #tpu.memory_space<vmem>>, vector<1x32x64xf32>
    %49 = vector.shape_cast %48 : vector<1x32x64xf32> to vector<32x64xf32>
    %cst_36 = arith.constant dense<0.000000e+00> : vector<8x64xf32>
    %50 = tpu.matmul %43, %49, %cst_36 {dimension_numbers = #tpu.dot_dimension_numbers<[1], [0], [0], [1], [0, 0, 1, 1], [], []>} : vector<8x32xf32>, vector<32x64xf32>, vector<8x64xf32> -> vector<8x64xf32>
    %51 = vector.broadcast %46 : vector<1x64xf32> to vector<8x64xf32>
    %52 = arith.addf %50, %51 : vector<8x64xf32>
    %cst_37 = arith.constant 0.000000e+00 : f32
    %53 = vector.broadcast %cst_37 : f32 to vector<8x64xf32>
    %54 = arith.maximumf %52, %53 : vector<8x64xf32>
    %c1_38 = arith.constant 1 : index
    %c0_39 = arith.constant 0 : index
    %c0_40 = arith.constant 0 : index
    %55 = vector.load %arg6[%c1_38, %c0_39, %c0_40] : memref<2x64x32xf32, #tpu.memory_space<vmem>>, vector<1x64x32xf32>
    %56 = vector.shape_cast %55 : vector<1x64x32xf32> to vector<64x32xf32>
    %cst_41 = arith.constant dense<0.000000e+00> : vector<8x32xf32>
    %57 = tpu.matmul %54, %56, %cst_41 {dimension_numbers = #tpu.dot_dimension_numbers<[1], [0], [0], [1], [0, 0, 1, 1], [], []>} : vector<8x64xf32>, vector<64x32xf32>, vector<8x32xf32> -> vector<8x32xf32>
    %58 = vector.broadcast %47 : vector<1x32xf32> to vector<8x32xf32>
    %59 = arith.addf %57, %58 : vector<8x32xf32>
    %60 = arith.addf %59, %32 : vector<8x32xf32>
    %c0_42 = arith.constant 0 : index
    %c0_43 = arith.constant 0 : index
    %61 = vector.load %arg8[%c0_42, %c0_43] : memref<8x32xf32, #tpu.memory_space<vmem>>, vector<8x32xf32>
    tpu.vector_store %arg8[%c0_42, %c0_43], %60 {strides = array<i32>} : memref<8x32xf32, #tpu.memory_space<vmem>>, vector<8x32xf32>,
    return
  }
}

</mosaic_0001>

<bundles_post_ra>
// kernel: tpu_custom_call.1
= control target key start
LH: loop header
LB: loop body
LE: loop exit
PB: predicated region body
PF: predicated region fallthrough
CT: control target
= control target key end

     0   :  { %13 = vsyncpa [#allocation5], 0  ;;  %s1196_s0 = inlined_call_operand.vmem [shape: f32[2], index: 0, kind: input, shape index: {}]   ;;  %s1197_s1 = inlined_call_operand.hbm [shape: f32[8,32], index: 1, kind: input, shape index: {}, may-alias: {1,8}]   ;;  %s1198_s2 = inlined_call_operand.vmem [shape: f32[16,8], index: 2, kind: input, shape index: {}]   ;;  %s1199_s3 = inlined_call_operand.vmem [shape: f32[8,16], index: 3, kind: input, shape index: {}]   ;;  %s1200_s4 = inlined_call_operand.vmem [shape: f32[2,16,32], index: 4, kind: input, shape index: {}]   ;;  %s1201_s5 = inlined_call_operand.vmem [shape: f32[2,32,64], index: 5, kind: input, shape index: {}]   ;;  %s1202_s6 = inlined_call_operand.vmem [shape: f32[2,64,32], index: 6, kind: input, shape index: {}]   ;;  %s1203_s7 = inlined_call_operand.vmem [shape: f32[2,2,64], index: 7, kind: input, shape index: {}]   ;;  %s1204_s8 = inlined_call_operand.hbm [shape: f32[8,32], index: 8, kind: output, shape index: {}, may-alias: {1,8}]  }
   0x1   :  { %14 = vsyncpa [#allocation3], 0 }
   0x2   :  { %15 = vsyncpa [#allocation4], 0  ;;  %s22_s29 = sshll.u32 %s1196_s0, 4  ;;  %s23_s29 = int_to_ptr.vmem [resolvable:$true] %s22_s29 }
   0x3   :  { %s893_s30 = scalar_lea.vmem %s23_s29, 16  ;;  %p898_p1 = scmp.lt.s32.totalorder %s23_s29, %s23_s29 }
   0x4   :  { %p894_p0 = scmp.ne.s32.totalorder %s23_s29, %s893_s30  ;;  %p899_p2 = scmp.lt.s32.totalorder %s893_s30, %s893_s30 }
   0x6   :  { %p900_p3 = por %p899_p2, %p898_p1 }
   0x8   :  { %p901_p4 = pnand %p900_p3, %p894_p0 }
   0xa   :  { %904 = shalt.err (!%p901_p4)
}
   0xb   :  { %s951_s9 = smov [#allocation2]   ;;  %s952_s10 = smov [#allocation6]  }
   0xc   :  { %25 = dma.vmem_to_smem %s23_s29, 16, %s951_s9, [#allocation5]  }
   0xd   :  { %s32_s11 = sshll.u32 %s952_s10, 4  ;;  %s33_s11 = int_to_ptr.vmem [resolvable:$true] %s32_s11 }
   0xe   :  { %s913_s12 = scalar_lea.vmem %s33_s11, 128  ;;  %p918_p6 = scmp.lt.s32.totalorder %s33_s11, %s33_s11 }
   0xf   :  { %p914_p5 = scmp.ne.s32.totalorder %s33_s11, %s913_s12  ;;  %p919_p7 = scmp.lt.s32.totalorder %s913_s12, %s913_s12 }
  0x11   :  { %p920_p8 = por %p919_p7, %p918_p6 }
  0x13   :  { %p921_p9 = pnand %p920_p8, %p914_p5 }
  0x15   :  { %924 = shalt.err (!%p921_p9)
}
  0x16   :  { %35 = dma.hbm_to_vmem [thread:$0]  %s1197_s1, 128, %s33_s11, [#allocation3]  }
  0x17   :  { %945 = dma.done.wait [#allocation5], 16  }
  0x18   :  { %946 = vsyncadd [#allocation5], 4294967280 }
  0x19   :  { %947 = dma.done.wait [#allocation3], 128  }
  0x1a   :  { %948 = vsyncadd [#allocation3], 4294967168 }
  0x1b   :  { %54 = sfence }
  0x1c   :  { %v1007_v0 = vld [vmem:[#allocation6] sm:$0xff]  ;;  %vm61_vm0 = vcmask 64512   ;;  %v1017_v2 = vld [vmem:[%s1198_s2 + $0x8] sm:$0xff]  ;;  %v953_v3 = vmov 0.0   ;;  %vm954_vm1 = vmmov 0   ;;  %vm145_vm2 = vcmask 130048  }
  0x1d   :  { %v1012_v1 = vld [vmem:[%s1198_s2] sm:$0xff]  ;;  %804 = vmatprep.subr.mxu0 %v1007_v0  ;;  %827 = vmatprep.subr.mxu1 %v953_v3  ;;  %v60_v4 = vld [vmem:[%s1200_s4 + $0x8] sm:$0xff]  ;;  %v227_v13 = vld [vmem:[%s1201_s5 + $0x18] sm:$0xff]  ;;  %s219_s16 = sld [smem:[#allocation2]]  ;;  %vm232_vm3 = vcmask 261120   ;;  %v228_v30 = vlaneseq  ;;  %vm319_vm4 = vcmask 523264  }
  0x1e   :  { %806 = vmatprep.mubr.msk.f32.mxu0 %vm61_vm0, %v1012_v1  ;;  %805 = vmatpush3.msra.mxu0 %v1007_v0  ;;  %v59_v6 = vld [vmem:[%s1200_s4] sm:$0xff]  ;;  %v226_v14 = vld [vmem:[%s1201_s5 + $0x10] sm:$0xff]  ;;  %v225_v15 = vld [vmem:[%s1201_s5 + $0x8] sm:$0xff]  ;;  %s748_s2 = sld [smem:[#allocation2 + $0x1]] }
  0x1f   :  { %807 = vmatmul.mubr.msk.f32.vlgmr.msra.gmra.mxu0 %vm61_vm0, %v1017_v2  ;;  %809 = vmatprep.subr.mxu0 %v953_v3  ;;  %v1040_v12 = vld [vmem:[%s1199_s3] sm:$0xff]  ;;  %v314_v17 = vld [vmem:[%s1202_s6 + $0x38] sm:$0xff]  ;;  %v313_v18 = vld [vmem:[%s1202_s6 + $0x30] sm:$0xff]  ;;  %v1099_v31 = vshrl.u32 %v228_v30, 7  ;;  %s955_s3 = smov [#allocation7]  }
  0x20   :  { %813 = vmatprep.mubr.msk.f32.mxu0 %vm954_vm1, %v953_v3  ;;  %843 = vmatprep.mubr.msk.f32.mxu1 %vm954_vm1, %v953_v3  ;;  %v224_v16 = vld [vmem:[%s1201_s5] sm:$0xff]  ;;  %v312_v19 = vld [vmem:[%s1202_s6 + $0x28] sm:$0xff]  ;;  %v310_v21 = vld [vmem:[%s1202_s6 + $0x18] sm:$0xff] }
  0x21   :  { %828 = vmatpush3.msra.mxu1 %v314_v17  ;;  %v311_v20 = vld [vmem:[%s1202_s6 + $0x20] sm:$0xff]  ;;  %v309_v27 = vld [vmem:[%s1202_s6 + $0x10] sm:$0xff]  ;;  %v308_v28 = vld [vmem:[%s1202_s6 + $0x8] sm:$0xff]  ;;  %v230_v32 = vsub.s32 0, %v1099_v31  ;;  %v317_v39 = vsub.s32 1, %v1099_v31 }
  0x22   :  { %829 = vmatprep.subr.mxu1 %v953_v3  ;;  %v307_v29 = vld [vmem:[%s1202_s6] sm:$0xff]  ;;  %v744_v46 = vld [vmem:[%s1200_s4 + $0x18] sm:$0xff]  ;;  %v743_v48 = vld [vmem:[%s1200_s4 + $0x10] sm:$0xff] }
  0x23   :  { %830 = vmatpush3.msra.mxu1 %v313_v18  ;;  %v220_v22 = vstv %s219_s16  ;;  %v223_v33 = vld [vmem:[%s1203_s7] sm:$0x3]  ;;  %v753_v54 = vld [vmem:[%s1201_s5 + $0x38] sm:$0xff]  ;;  %v752_v55 = vld [vmem:[%s1201_s5 + $0x30] sm:$0xff] }
  0x24   :  { %831 = vmatprep.subr.mxu1 %v953_v3  ;;  %v221_v23 = vmul.f32 %v220_v22, %v1007_v0  ;;  %v231_v34 = vrot.slane %v223_v33, %v230_v32  ;;  %v318_v40 = vrot.slane %v223_v33, %v317_v39  ;;  %v751_v56 = vld [vmem:[%s1201_s5 + $0x28] sm:$0xff]  ;;  %v750_v57 = vld [vmem:[%s1201_s5 + $0x20] sm:$0xff]  ;;  %v762_v58 = vld [vmem:[%s1202_s6 + $0x78] sm:$0xff]  ;;  %v546_v63 = vstv %s748_s2 }
  0x25   :  { %832 = vmatpush3.msra.mxu1 %v312_v19  ;;  %v761_v59 = vld [vmem:[%s1202_s6 + $0x70] sm:$0xff]  ;;  %v760_v60 = vld [vmem:[%s1202_s6 + $0x68] sm:$0xff]  ;;  %v759_v61 = vld [vmem:[%s1202_s6 + $0x60] sm:$0xff] }
  0x26   :  { %833 = vmatprep.subr.mxu1 %v953_v3  ;;  %v758_v62 = vld [vmem:[%s1202_s6 + $0x58] sm:$0xff] }
  0x27   :  { %834 = vmatpush3.msra.mxu1 %v311_v20 }
  0x28   :  { %835 = vmatprep.subr.mxu1 %v953_v3 }
  0x29   :  { %836 = vmatpush3.msra.mxu1 %v310_v21 }
  0x2a   :  { %837 = vmatprep.subr.mxu1 %v953_v3 }
  0x2b   :  { %838 = vmatpush3.msra.mxu1 %v309_v27 }
  0x2c   :  { %839 = vmatprep.subr.mxu1 %v953_v3 }
  0x2d   :  { %840 = vmatpush3.msra.mxu1 %v308_v28 }
  0x2e   :  { %841 = vmatprep.subr.mxu1 %v953_v3 }
  0x2f   :  { %842 = vmatpush3.msra.mxu1 %v307_v29 }
  0x30   :  { %869 = vmatprep.subr.mxu1 %v953_v3 }
  0xdf   :  { %v808_v5 = vpop.f32.mrf.mxu0 }
  0xe0   :  { %v140_v7 = vadd.f32 %v808_v5, %v60_v4  ;;  %v757_v5 = vld [vmem:[%s1202_s6 + $0x50] sm:$0xff] }
  0xe1   :  { %v134_v8 = vpop.f32.mrf.mxu0 }
  0xe2   :  { %v144_v9 = vmax.f32 %v140_v7, 0.0  ;;  %v135_v10 = vadd.f32 %v134_v8, %v59_v6  ;;  %v756_v6 = vld [vmem:[%s1202_s6 + $0x48] sm:$0xff]  ;;  %v755_v7 = vld [vmem:[%s1202_s6 + $0x40] sm:$0xff]  ;;  %s728_s6 = sshll.u32 %s955_s3, 4  ;;  %s729_s6 = int_to_ptr.vmem [resolvable:$true] %s728_s6 }
  0xe3   :  { %v749_v8 = vld [vmem:[%s1203_s7 + $0x2] sm:$0x3]  ;;  %s925_s7 = scalar_lea.vmem %s729_s6, 128  ;;  %p930_p11 = scmp.lt.s32.totalorder %s729_s6, %s729_s6 }
  0xe4   :  { %v143_v11 = vmax.f32 %v135_v10, 0.0  ;;  %810 = vmatpush3.msra.mxu0 %v144_v9  ;;  %v559_v9 = vrot.slane %v749_v8, %v230_v32  ;;  %p926_p10 = scmp.ne.s32.totalorder %s729_s6, %s925_s7  ;;  %p931_p12 = scmp.lt.s32.totalorder %s925_s7, %s925_s7 }
  0xe5   :  { %811 = vmatprep.subr.mxu0 %v953_v3 }
  0xe6   :  { %812 = vmatpush3.msra.mxu0 %v143_v11  ;;  %p932_p13 = por %p931_p12, %p930_p11 }
  0xe7   :  { %814 = vmatmul.mubr.msk.f32.vlgmr.msra.gmra.mxu0 %vm145_vm2, %v1040_v12  ;;  %816 = vmatprep.subr.mxu0 %v953_v3 }
  0xe8   :  { %817 = vmatpush3.msra.mxu0 %v227_v13  ;;  %824 = vmatprep.mubr.msk.f32.mxu0 %vm954_vm1, %v953_v3  ;;  %p933_p0 = pnand %p932_p13, %p926_p10 }
  0xe9   :  { %818 = vmatprep.subr.mxu0 %v953_v3 }
  0xea   :  { %819 = vmatpush3.msra.mxu0 %v226_v14 }
  0xeb   :  { %820 = vmatprep.subr.mxu0 %v953_v3 }
  0xec   :  { %821 = vmatpush3.msra.mxu0 %v225_v15 }
  0xed   :  { %822 = vmatprep.subr.mxu0 %v953_v3 }
  0xee   :  { %823 = vmatpush3.msra.mxu0 %v224_v16 }
 0x1a7   :  { %v215_v24 = vpop.f32.mrf.mxu0 }
 0x1a8   :  { %v222_v25 = vadd.f32 %v221_v23, %v215_v24 }
 0x1a9   :  { %v815_v26 = vpop.f32.mrf.mxu0 }
 0x1aa   :  { %825 = vmatmul.mubr.msk.f32.vlgmr.msra.gmra.mxu0 %vm232_vm3, %v222_v25 }
 0x1ab   :  { %848 = vmatprep.mubr.msk.f32.mxu0 %vm61_vm0, %v1012_v1 }
 0x26a   :  { %v302_v35 = vpop.f32.mrf.mxu0 }
 0x26b   :  { %v303_v36 = vadd.f32 %v302_v35, %v231_v34 }
 0x26c   :  { %v826_v37 = vpop.f32.mrf.mxu0 }
 0x26d   :  { %v306_v38 = vmax.f32 %v303_v36, 0.0 }
 0x26f   :  { %844 = vmatmul.mubr.msk.f32.vlgmr.msra.gmra.mxu1 %vm319_vm4, %v306_v38 }
 0x270   :  { %885 = vmatprep.mubr.msk.f32.mxu1 %vm954_vm1, %v953_v3  ;;  %870 = vmatpush3.msra.mxu1 %v762_v58 }
 0x271   :  { %871 = vmatprep.subr.mxu1 %v953_v3 }
 0x272   :  { %872 = vmatpush3.msra.mxu1 %v761_v59 }
 0x273   :  { %873 = vmatprep.subr.mxu1 %v953_v3 }
 0x274   :  { %874 = vmatpush3.msra.mxu1 %v760_v60 }
 0x275   :  { %875 = vmatprep.subr.mxu1 %v953_v3 }
 0x276   :  { %876 = vmatpush3.msra.mxu1 %v759_v61 }
 0x277   :  { %877 = vmatprep.subr.mxu1 %v953_v3 }
 0x278   :  { %878 = vmatpush3.msra.mxu1 %v758_v62 }
 0x279   :  { %879 = vmatprep.subr.mxu1 %v953_v3 }
 0x27a   :  { %880 = vmatpush3.msra.mxu1 %v757_v5 }
 0x27b   :  { %881 = vmatprep.subr.mxu1 %v953_v3 }
 0x27c   :  { %882 = vmatpush3.msra.mxu1 %v756_v6 }
 0x27d   :  { %883 = vmatprep.subr.mxu1 %v953_v3 }
 0x27e   :  { %884 = vmatpush3.msra.mxu1 %v755_v7 }
 0x32f   :  { %v389_v41 = vpop.f32.mrf.mxu1 }
 0x330   :  { %v390_v42 = vadd.f32 %v389_v41, %v318_v40 }
 0x331   :  { %v845_v43 = vpop.f32.mrf.mxu1 }
 0x332   :  { %v393_v44 = vmax.f32 %v390_v42, 0.0 }
 0x334   :  { %v1114_v45 = vadd.f32 %v393_v44, %v1007_v0 }
 0x336   :  { %846 = vmatprep.subr.mxu0 %v1114_v45  ;;  %v547_v0 = vmul.f32 %v546_v63, %v1114_v45 }
 0x337   :  { %847 = vmatpush3.msra.mxu0 %v1114_v45 }
 0x338   :  { %849 = vmatmul.mubr.msk.f32.vlgmr.msra.gmra.mxu0 %vm61_vm0, %v1017_v2  ;;  %851 = vmatprep.subr.mxu0 %v953_v3 }
 0x339   :  { %855 = vmatprep.mubr.msk.f32.mxu0 %vm954_vm1, %v953_v3 }
 0x3f8   :  { %v850_v47 = vpop.f32.mrf.mxu0 }
 0x3f9   :  { %v470_v49 = vadd.f32 %v850_v47, %v744_v46 }
 0x3fa   :  { %v464_v50 = vpop.f32.mrf.mxu0 }
 0x3fb   :  { %v474_v51 = vmax.f32 %v470_v49, 0.0  ;;  %v465_v52 = vadd.f32 %v743_v48, %v464_v50 }
 0x3fd   :  { %v473_v53 = vmax.f32 %v465_v52, 0.0  ;;  %852 = vmatpush3.msra.mxu0 %v474_v51 }
 0x3fe   :  { %853 = vmatprep.subr.mxu0 %v953_v3 }
 0x3ff   :  { %854 = vmatpush3.msra.mxu0 %v473_v53 }
 0x400   :  { %856 = vmatmul.mubr.msk.f32.vlgmr.msra.gmra.mxu0 %vm145_vm2, %v1040_v12  ;;  %858 = vmatprep.subr.mxu0 %v953_v3 }
 0x401   :  { %859 = vmatpush3.msra.mxu0 %v753_v54  ;;  %866 = vmatprep.mubr.msk.f32.mxu0 %vm954_vm1, %v953_v3 }
 0x402   :  { %860 = vmatprep.subr.mxu0 %v953_v3 }
 0x403   :  { %861 = vmatpush3.msra.mxu0 %v752_v55 }
 0x404   :  { %862 = vmatprep.subr.mxu0 %v953_v3 }
 0x405   :  { %863 = vmatpush3.msra.mxu0 %v751_v56 }
 0x406   :  { %864 = vmatprep.subr.mxu0 %v953_v3  ;;  %v646_v3 = vrot.slane %v749_v8, %v317_v39 }
 0x407   :  { %865 = vmatpush3.msra.mxu0 %v750_v57 }
 0x4c0   :  { %v541_v1 = vpop.f32.mrf.mxu0 }
 0x4c1   :  { %v548_v2 = vadd.f32 %v547_v0, %v541_v1 }
 0x4c2   :  { %v857_v4 = vpop.f32.mrf.mxu0 }
 0x4c3   :  { %867 = vmatmul.mubr.msk.f32.vlgmr.msra.gmra.mxu0 %vm232_vm3, %v548_v2 }
 0x583   :  { %v629_v10 = vpop.f32.mrf.mxu0 }
 0x584   :  { %v630_v11 = vadd.f32 %v629_v10, %v559_v9 }
 0x585   :  { %v868_v12 = vpop.f32.mrf.mxu0 }
 0x586   :  { %v633_v13 = vmax.f32 %v630_v11, 0.0 }
 0x588   :  { %886 = vmatmul.mubr.msk.f32.vlgmr.msra.gmra.mxu1 %vm319_vm4, %v633_v13 }
 0x648   :  { %v716_v14 = vpop.f32.mrf.mxu1 }
 0x649   :  { %v717_v15 = vadd.f32 %v716_v14, %v646_v3 }
 0x64a   :  { %v887_v16 = vpop.f32.mrf.mxu1 }
 0x64b   :  { %v720_v17 = vadd.f32 %v717_v15, %v1114_v45 }
 0x64d   :  { %721 = vst.msk [vmem:[#allocation7] sm:$0xff] %vm232_vm3, %v720_v17 }
 0x64e   :  { %936 = shalt.err (!%p933_p0)
}
 0x64f   :  { %731 = dma.vmem_to_hbm [thread:$0]  %s729_s6, 128, %s1204_s8, [#allocation4]  }
 0x650   :  { %949 = dma.done.wait [#allocation4], 128  }
 0x651   :  { %950 = vsyncadd [#allocation4], 4294967168 }
 0x652   :  { %735 = vsyncpa [#allocation3], 1 }
 0x653   :  { %736 = vsyncpa [#allocation4], 1 }
 0x654   :  { %737 = vsyncpa [#allocation5], 1 }

</bundles_post_ra>
